<compile_context>
chip_gen: v7x
topology: tpu7x:2x2x1
jax: 0.10.0
libtpu: 0.0.40
codegen_flags: <defaults>
</compile_context>

<pallas_src>
import jax
import jax.numpy as jnp
from jax.experimental import pallas as pl
from jax.experimental.pallas import tpu as pltpu


def _round_up(x, m):
    return ((x + m - 1) // m) * m


def glu_block_kernel(x_ref, w1_ref, b1_ref, w2_ref, b2_ref, o_ref, acc_ref):
    """One (row-tile i, dim_f-chunk k) grid step.

    x_ref  : (TN, DM)       bf16  row tile of activations (same block over k)
    w1_ref : (DM, 2*TK)     bf16  packed [linear-half | gate-half] chunk of W1^T
    b1_ref : (1, 2*TK)      f32   packed bias chunk
    w2_ref : (TK, DM)       bf16  chunk of W2^T
    b2_ref : (1, DM)        f32
    o_ref  : (TN, DM)       out dtype, written on the last k step
    acc_ref: (TN, DM)       f32   VMEM accumulator across k
    """
    k = pl.program_id(1)
    tk = w2_ref.shape[0]  # static chunk width (multiple of 128)

    @pl.when(k == 0)
    def _():
        acc_ref[...] = jnp.zeros_like(acc_ref)

    x = x_ref[...]
    # Single full-width matmul covering both GLU halves for this chunk (MXU,
    # bf16 operands, f32 accumulation).
    h = jnp.dot(x, w1_ref[...], preferred_element_type=jnp.float32)
    h = h + b1_ref[...]                        # (TN, 2*TK) f32
    h_lin, h_gate = h[:, :tk], h[:, tk:]       # lane-aligned static slices
    gated = h_lin * jnp.maximum(h_gate, 0.0)   # ReLU-gated GLU, f32

    acc_ref[...] += jnp.dot(gated.astype(w2_ref.dtype), w2_ref[...],
                            preferred_element_type=jnp.float32)

    @pl.when(k == pl.num_programs(1) - 1)
    def _():
        o_ref[...] = (acc_ref[...] + b2_ref[...]).astype(o_ref.dtype)


def glu_block(x, w1, b1, w2, b2, *, row_tile=256, k_tile=512,
              compute_dtype=jnp.bfloat16):
    """GLU feed-forward block.

    x : (..., d_model)
    w1: (dim_feedforward, d_model),      b1: (dim_feedforward,)   (nn.Linear)
    w2: (d_model, dim_feedforward // 2), b2: (d_model,)
    """
    d_model = x.shape[-1]
    dim_ff = w1.shape[0]
    dim_f = dim_ff // 2

    orig_shape = x.shape
    x2d = x.reshape(-1, d_model)
    n = x2d.shape[0]
    in_dtype = x.dtype

    # ---- tiling / padding decisions ---------------------------------------
    d_model_p = _round_up(d_model, 128)          # lane axis -> multiple of 128
    dim_f_p = _round_up(dim_f, 128)

    tn = min(_round_up(row_tile, 8), _round_up(n, 8))   # row tile (mult of 8)
    n_p = _round_up(n, tn)                               # pad ragged N

    # dim_f chunk: multiple of 128, divides dim_f_p, capped by k_tile.
    tk = 128
    for cand in (512, 384, 256, 128):
        if cand <= max(k_tile, 128) and dim_f_p % cand == 0:
            tk = cand
            break
    nk = dim_f_p // tk

    # ---- weight / activation prep: pad, split, chunk-pack, cast to bf16 ----
    xp = jnp.pad(x2d, ((0, n_p - n), (0, d_model_p - d_model))
                 ).astype(compute_dtype)

    w1_t = w1.T                                              # (d_model, dim_ff)
    w1_lin = jnp.pad(w1_t[:, :dim_f],
                     ((0, d_model_p - d_model), (0, dim_f_p - dim_f)))
    w1_gate = jnp.pad(w1_t[:, dim_f:],
                      ((0, d_model_p - d_model), (0, dim_f_p - dim_f)))
    # Chunk-interleaved packing: columns [lin_k | gate_k] per k chunk.
    w1_packed = jnp.concatenate(
        [w1_lin.reshape(d_model_p, nk, tk), w1_gate.reshape(d_model_p, nk, tk)],
        axis=2).reshape(d_model_p, 2 * dim_f_p).astype(compute_dtype)

    b1_lin = jnp.pad(b1[:dim_f], (0, dim_f_p - dim_f))
    b1_gate = jnp.pad(b1[dim_f:], (0, dim_f_p - dim_f))
    b1_packed = jnp.concatenate(
        [b1_lin.reshape(nk, tk), b1_gate.reshape(nk, tk)],
        axis=1).reshape(1, 2 * dim_f_p).astype(jnp.float32)

    w2_p = jnp.pad(w2.T, ((0, dim_f_p - dim_f), (0, d_model_p - d_model))
                   ).astype(compute_dtype)
    b2_p = jnp.pad(b2, (0, d_model_p - d_model)
                   ).reshape(1, d_model_p).astype(jnp.float32)

    grid = (n_p // tn, nk)
    itemsize = jnp.dtype(compute_dtype).itemsize
    cost = pl.CostEstimate(
        flops=2 * n_p * d_model_p * (2 * dim_f_p)     # linear1 (both halves)
        + 2 * n_p * dim_f_p * d_model_p,              # linear2
        transcendentals=0,
        bytes_accessed=(xp.size * itemsize
                        + w1_packed.size * itemsize
                        + w2_p.size * itemsize
                        + (b1_packed.size + b2_p.size) * 4
                        + n_p * d_model_p * jnp.dtype(in_dtype).itemsize),
    )

    out = pl.pallas_call(
        glu_block_kernel,
        out_shape=jax.ShapeDtypeStruct((n_p, d_model_p), in_dtype),
        grid_spec=pltpu.PrefetchScalarGridSpec(
            num_scalar_prefetch=0,
            grid=grid,
            in_specs=[
                pl.BlockSpec((tn, d_model_p), lambda i, k: (i, 0)),      # x
                pl.BlockSpec((d_model_p, 2 * tk), lambda i, k: (0, k)),  # W1 pk
                pl.BlockSpec((1, 2 * tk), lambda i, k: (0, k)),          # b1 pk
                pl.BlockSpec((tk, d_model_p), lambda i, k: (k, 0)),      # W2^T
                pl.BlockSpec((1, d_model_p), lambda i, k: (0, 0)),       # b2
            ],
            out_specs=pl.BlockSpec((tn, d_model_p), lambda i, k: (i, 0)),
            scratch_shapes=[pltpu.VMEM((tn, d_model_p), jnp.float32)],
        ),
        compiler_params=pltpu.CompilerParams(
            dimension_semantics=("parallel", "arbitrary"),
            # Cap is safe on all chips (actual per-step usage << 64 MiB);
            # raises the 16/32 MiB scoped default so larger tiles are allowed.
            vmem_limit_bytes=64 * 1024 * 1024,
        ),
        cost_estimate=cost,
    )(xp, w1_packed, b1_packed, w2_p, b2_p)

    return out[:n, :d_model].reshape(orig_shape)


def reference_glu_block(x, w1, b1, w2, b2):
    dim_f = w1.shape[0] // 2
    h = jnp.einsum('...d,fd->...f', x, w1) + b1
    x_lin, x_gate = h[..., :dim_f], h[..., dim_f:]
    g = x_lin * jnp.maximum(x_gate, 0.0)
    return jnp.einsum('...f,df->...d', g, w2) + b2


if __name__ == "__main__":
    d_model = 64
    dim_feedforward = 128
    dim_f = dim_feedforward // 2
    batch, seq = 2, 8

    key = jax.random.PRNGKey(0)
    kx, kw1, kb1, kw2, kb2 = jax.random.split(key, 5)

    x = jax.random.normal(kx, (batch, seq, d_model), dtype=jnp.float32)
    # Shapes match nn.Linear conventions: (out, in) weights + (out,) biases.
    w1 = jax.random.normal(kw1, (dim_feedforward, d_model), jnp.float32) * 0.05
    b1 = jax.random.normal(kb1, (dim_feedforward,), jnp.float32) * 0.05
    w2 = jax.random.normal(kw2, (d_model, dim_f), jnp.float32) * 0.05
    b2 = jax.random.normal(kb2, (d_model,), jnp.float32) * 0.05

    out = glu_block(x, w1, b1, w2, b2)
    out = jax.block_until_ready(out)

    ref = reference_glu_block(x, w1, b1, w2, b2)
    assert out.shape == (batch, seq, d_model)
    # bf16 MXU operands with f32 accumulation -> loosened tolerance.
    assert jnp.allclose(out, ref, atol=2e-2, rtol=2e-2), "mismatch vs reference"

    print("KERNEL_OK")
</pallas_src>

<mosaic_0001>
module attributes {stable_mosaic.version = 11 : i64} {
  func.func @glu_block_kernel(%arg0: i32, %arg1: i32, %arg2: memref<16x128xbf16, #tpu.memory_space<vmem>>, %arg3: memref<128x256xbf16, #tpu.memory_space<vmem>>, %arg4: memref<1x256xf32, #tpu.memory_space<vmem>>, %arg5: memref<128x128xbf16, #tpu.memory_space<vmem>>, %arg6: memref<1x128xf32, #tpu.memory_space<vmem>>, %arg7: memref<16x128xf32, #tpu.memory_space<vmem>>, %arg8: memref<16x128xf32, #tpu.memory_space<vmem>>) attributes {dimension_semantics = [#tpu.dimension_semantics<parallel>, #tpu.dimension_semantics<arbitrary>], iteration_bounds = array<i64: 1, 1>, scalar_prefetch = 0 : i64, scratch_operands = 1 : i64, tpu.core_type = #tpu.core_type<tc>, window_params = [{transform_indices = @transform_0, window_bounds = array<i64: 16, 128>}, {transform_indices = @transform_1, window_bounds = array<i64: 128, 256>}, {transform_indices = @transform_2, window_bounds = array<i64: 1, 256>}, {transform_indices = @transform_3, window_bounds = array<i64: 128, 128>}, {pipeline_mode = #tpu.pipeline_mode<synchronous>, transform_indices = @transform_4, window_bounds = array<i64: 1, 128>}, {transform_indices = @transform_5, window_bounds = array<i64: 16, 128>}]} {
    %c0_i32 = arith.constant 0 : i32
    %0 = arith.cmpi eq, %arg1, %c0_i32 : i32
    %1 = arith.extui %0 : i1 to i32
    %c0_i32_0 = arith.constant 0 : i32
    %2 = arith.cmpi ne, %1, %c0_i32_0 : i32
    scf.if %2 {
      %cst_16 = arith.constant 0.000000e+00 : f32
      %23 = vector.broadcast %cst_16 : f32 to vector<16x128xf32>
      %c0_17 = arith.constant 0 : index
      %c0_18 = arith.constant 0 : index
      %24 = vector.load %arg8[%c0_17, %c0_18] : memref<16x128xf32, #tpu.memory_space<vmem>>, vector<16x128xf32>
      tpu.vector_store %arg8[%c0_17, %c0_18], %23 {strides = array<i32>} : memref<16x128xf32, #tpu.memory_space<vmem>>, vector<16x128xf32>,
    } else {
    }
    %c0 = arith.constant 0 : index
    %c0_1 = arith.constant 0 : index
    %3 = vector.load %arg2[%c0, %c0_1] : memref<16x128xbf16, #tpu.memory_space<vmem>>, vector<16x128xbf16>
    %c0_2 = arith.constant 0 : index
    %c0_3 = arith.constant 0 : index
    %4 = vector.load %arg3[%c0_2, %c0_3] : memref<128x256xbf16, #tpu.memory_space<vmem>>, vector<128x256xbf16>
    %cst = arith.constant dense<0.000000e+00> : vector<16x256xf32>
    %5 = tpu.matmul %3, %4, %cst {dimension_numbers = #tpu.dot_dimension_numbers<[1], [0], [0], [1], [0, 0, 1, 1], [], []>} : vector<16x128xbf16>, vector<128x256xbf16>, vector<16x256xf32> -> vector<16x256xf32>
    %c0_4 = arith.constant 0 : index
    %c0_5 = arith.constant 0 : index
    %6 = vector.load %arg4[%c0_4, %c0_5] : memref<1x256xf32, #tpu.memory_space<vmem>>, vector<1x256xf32>
    %7 = vector.broadcast %6 : vector<1x256xf32> to vector<16x256xf32>
    %8 = arith.addf %5, %7 : vector<16x256xf32>
    %9 = vector.extract_strided_slice %8 {offsets = [0, 0], sizes = [16, 128], strides = [1, 1]} : vector<16x256xf32> to vector<16x128xf32>
    %10 = vector.extract_strided_slice %8 {offsets = [0, 128], sizes = [16, 128], strides = [1, 1]} : vector<16x256xf32> to vector<16x128xf32>
    %cst_6 = arith.constant 0.000000e+00 : f32
    %11 = vector.broadcast %cst_6 : f32 to vector<16x128xf32>
    %12 = arith.maximumf %10, %11 : vector<16x128xf32>
    %13 = arith.mulf %9, %12 : vector<16x128xf32>
    %c0_7 = arith.constant 0 : index
    %c0_8 = arith.constant 0 : index
    %14 = vector.load %arg8[%c0_7, %c0_8] : memref<16x128xf32, #tpu.memory_space<vmem>>, vector<16x128xf32>
    %15 = arith.truncf %13 : vector<16x128xf32> to vector<16x128xbf16>
    %c0_9 = arith.constant 0 : index
    %c0_10 = arith.constant 0 : index
    %16 = vector.load %arg5[%c0_9, %c0_10] : memref<128x128xbf16, #tpu.memory_space<vmem>>, vector<128x128xbf16>
    %cst_11 = arith.constant dense<0.000000e+00> : vector<16x128xf32>
    %17 = tpu.matmul %15, %16, %cst_11 {dimension_numbers = #tpu.dot_dimension_numbers<[1], [0], [0], [1], [0, 0, 1, 1], [], []>} : vector<16x128xbf16>, vector<128x128xbf16>, vector<16x128xf32> -> vector<16x128xf32>
    %18 = arith.addf %14, %17 : vector<16x128xf32>
    %c0_12 = arith.constant 0 : index
    %c0_13 = arith.constant 0 : index
    %19 = vector.load %arg8[%c0_12, %c0_13] : memref<16x128xf32, #tpu.memory_space<vmem>>, vector<16x128xf32>
    tpu.vector_store %arg8[%c0_12, %c0_13], %18 {strides = array<i32>} : memref<16x128xf32, #tpu.memory_space<vmem>>, vector<16x128xf32>,
    %c0_i32_14 = arith.constant 0 : i32
    %20 = arith.cmpi eq, %arg1, %c0_i32_14 : i32
    %21 = arith.extui %20 : i1 to i32
    %c0_i32_15 = arith.constant 0 : i32
    %22 = arith.cmpi ne, %21, %c0_i32_15 : i32
    scf.if %22 {
      %c0_16 = arith.constant 0 : index
      %c0_17 = arith.constant 0 : index
      %23 = vector.load %arg8[%c0_16, %c0_17] : memref<16x128xf32, #tpu.memory_space<vmem>>, vector<16x128xf32>
      %c0_18 = arith.constant 0 : index
      %c0_19 = arith.constant 0 : index
      %24 = vector.load %arg6[%c0_18, %c0_19] : memref<1x128xf32, #tpu.memory_space<vmem>>, vector<1x128xf32>
      %25 = vector.broadcast %24 : vector<1x128xf32> to vector<16x128xf32>
      %26 = arith.addf %23, %25 : vector<16x128xf32>
      %c0_20 = arith.constant 0 : index
      %c0_21 = arith.constant 0 : index
      %27 = vector.load %arg7[%c0_20, %c0_21] : memref<16x128xf32, #tpu.memory_space<vmem>>, vector<16x128xf32>
      tpu.vector_store %arg7[%c0_20, %c0_21], %26 {strides = array<i32>} : memref<16x128xf32, #tpu.memory_space<vmem>>, vector<16x128xf32>,
    } else {
    }
    return
  }
  func.func @transform_0(%arg0: i32, %arg1: i32) -> (i32, i32) {
    %c0_i32 = arith.constant 0 : i32
    %c0_i32_0 = arith.constant 0 : i32
    return %arg0, %c0_i32 : i32, i32
  }
  func.func @transform_1(%arg0: i32, %arg1: i32) -> (i32, i32) {
    %c0_i32 = arith.constant 0 : i32
    %c0_i32_0 = arith.constant 0 : i32
    return %c0_i32, %arg1 : i32, i32
  }
  func.func @transform_2(%arg0: i32, %arg1: i32) -> (i32, i32) {
    %c0_i32 = arith.constant 0 : i32
    %c0_i32_0 = arith.constant 0 : i32
    return %c0_i32, %arg1 : i32, i32
  }
  func.func @transform_3(%arg0: i32, %arg1: i32) -> (i32, i32) {
    %c0_i32 = arith.constant 0 : i32
    %c0_i32_0 = arith.constant 0 : i32
    return %arg1, %c0_i32 : i32, i32
  }
  func.func @transform_4(%arg0: i32, %arg1: i32) -> (i32, i32) {
    %c0_i32 = arith.constant 0 : i32
    %c0_i32_0 = arith.constant 0 : i32
    %c0_i32_1 = arith.constant 0 : i32
    return %c0_i32, %c0_i32_0 : i32, i32
  }
  func.func @transform_5(%arg0: i32, %arg1: i32) -> (i32, i32) {
    %c0_i32 = arith.constant 0 : i32
    %c0_i32_0 = arith.constant 0 : i32
    return %arg0, %c0_i32 : i32, i32
  }
}

</mosaic_0001>

<bundles_post_ra>
// kernel: tpu_custom_call.1
= control target key start
LH: loop header
LB: loop body
LE: loop exit
PB: predicated region body
PF: predicated region fallthrough
CT: control target
= control target key end

     0   :  { %10 = vsyncpa [#allocation4], 0  ;;  %s764_s0 = inlined_call_operand.hbm [shape: bf16[16,128], index: 0, kind: input, shape index: {}]   ;;  %s765_s1 = inlined_call_operand.hbm [shape: bf16[128,256], index: 1, kind: input, shape index: {}]   ;;  %s766_s2 = inlined_call_operand.hbm [shape: f32[1,256], index: 2, kind: input, shape index: {}]   ;;  %s767_s3 = inlined_call_operand.hbm [shape: bf16[128,128], index: 3, kind: input, shape index: {}]   ;;  %s768_s4 = inlined_call_operand.hbm [shape: f32[1,128], index: 4, kind: input, shape index: {}]   ;;  %s769_s5 = inlined_call_operand.hbm [shape: f32[16,128], index: 5, kind: output, shape index: {}]  }
   0x1   :  { %11 = vsyncpa [#allocation7], 0 }
   0x2   :  { %12 = vsyncpa [#allocation10], 0 }
   0x3   :  { %13 = vsyncpa [#allocation5], 0  ;;  %s643_s18 = smov [#allocation6]   ;;  %s503_s22 = scalar_lea.hbm %s765_s1, 2048 }
   0x4   :  { %s31_s19 = sshll.u32 %s643_s18, 4  ;;  %p504_p0 = scmp.ne.s32.totalorder %s765_s1, %s503_s22  ;;  %s32_s19 = int_to_ptr.vmem [resolvable:$true] %s31_s19 }
   0x5   :  { %p507_p1 = scmp.lt.u32.totalorder %s503_s22, %s765_s1 }
   0x7   :  { %p509_p2 = pnand %p507_p1, %p504_p0 }
   0x9   :  { %512 = shalt.err (!%p509_p2)
}
   0xa   :  { %s513_s27 = scalar_lea.vmem %s32_s19, 2048  ;;  %p518_p4 = scmp.lt.s32.totalorder %s32_s19, %s32_s19 }
   0xb   :  { %p514_p3 = scmp.ne.s32.totalorder %s32_s19, %s513_s27  ;;  %p519_p5 = scmp.lt.s32.totalorder %s513_s27, %s513_s27 }
   0xd   :  { %p520_p6 = por %p519_p5, %p518_p4 }
   0xf   :  { %p521_p7 = pnand %p520_p6, %p514_p3 }
  0x11   :  { %524 = shalt.err (!%p521_p7)
}
  0x12   :  { %s644_s28 = smov 128   ;;  %s645_s29 = smov 8  }
  0x13   :  { %37 = dma.hbm_to_vmem [thread:$0]  %s765_s1, 2048, %s32_s19, [#allocation7], %s644_s28, %s644_s28, %s645_s29  }
  0x14   :  { %s646_s7 = smov [#allocation9]   ;;  %s647_s9 = smov [#allocation3]  }
  0x15   :  { %s53_s8 = sshll.u32 %s646_s7, 4  ;;  %s19_s10 = sshll.u32 %s647_s9, 4  ;;  %s54_s8 = int_to_ptr.vmem [resolvable:$true] %s53_s8  ;;  %s20_s10 = int_to_ptr.vmem [resolvable:$true] %s19_s10 }
  0x16   :  { %s525_s13 = scalar_lea.hbm %s767_s3, 1024 }
  0x17   :  { %p526_p8 = scmp.ne.s32.totalorder %s767_s3, %s525_s13  ;;  %p529_p9 = scmp.lt.u32.totalorder %s525_s13, %s767_s3 }
  0x19   :  { %p531_p10 = pnand %p529_p9, %p526_p8 }
  0x1b   :  { %534 = shalt.err (!%p531_p10)
}
  0x1c   :  { %s535_s1 = scalar_lea.vmem %s54_s8, 1024  ;;  %p540_p12 = scmp.lt.s32.totalorder %s54_s8, %s54_s8 }
  0x1d   :  { %p536_p11 = scmp.ne.s32.totalorder %s54_s8, %s535_s1  ;;  %p541_p13 = scmp.lt.s32.totalorder %s535_s1, %s535_s1 }
  0x1f   :  { %p542_p0 = por %p541_p13, %p540_p12 }
  0x21   :  { %p543_p1 = pnand %p542_p0, %p536_p11 }
  0x23   :  { %546 = shalt.err (!%p543_p1)
}
  0x24   :  { %s648_s18 = smov 64   ;;  %s649_s19 = smov 4  }
  0x25   :  { %59 = dma.hbm_to_vmem [thread:$0]  %s767_s3, 1024, %s54_s8, [#allocation10], %s648_s18, %s648_s18, %s649_s19  }
  0x26   :  { %s547_s24 = scalar_lea.hbm %s764_s0, 128 }
  0x27   :  { %p548_p2 = scmp.ne.s32.totalorder %s764_s0, %s547_s24  ;;  %p551_p3 = scmp.lt.u32.totalorder %s547_s24, %s764_s0 }
  0x29   :  { %p553_p4 = pnand %p551_p3, %p548_p2 }
  0x2b   :  { %556 = shalt.err (!%p553_p4)
}
  0x2c   :  { %s557_s6 = scalar_lea.vmem %s20_s10, 128  ;;  %p562_p6 = scmp.lt.s32.totalorder %s20_s10, %s20_s10 }
  0x2d   :  { %p558_p5 = scmp.ne.s32.totalorder %s20_s10, %s557_s6  ;;  %p563_p7 = scmp.lt.s32.totalorder %s557_s6, %s557_s6 }
  0x2f   :  { %p564_p8 = por %p563_p7, %p562_p6 }
  0x31   :  { %p565_p9 = pnand %p564_p8, %p558_p5 }
  0x33   :  { %568 = shalt.err (!%p565_p9)
}
  0x34   :  { %25 = dma.hbm_to_vmem [thread:$0]  %s764_s0, 128, %s20_s10, [#allocation4], %s648_s18, %s648_s18, %s649_s19  }
  0x35   :  { %s650_s8 = smov [#allocation8]   ;;  %s651_s11 = smov [#allocation11]  }
  0x36   :  { %s44_s9 = sshll.u32 %s650_s8, 4  ;;  %s66_s12 = sshll.u32 %s651_s11, 4  ;;  %s45_s9 = int_to_ptr.vmem [resolvable:$true] %s44_s9  ;;  %s67_s12 = int_to_ptr.vmem [resolvable:$true] %s66_s12 }
  0x37   :  { %s569_s15 = scalar_lea.hbm %s766_s2, 32 }
  0x38   :  { %p570_p10 = scmp.ne.s32.totalorder %s766_s2, %s569_s15  ;;  %p573_p11 = scmp.lt.u32.totalorder %s569_s15, %s766_s2 }
  0x3a   :  { %p575_p12 = pnand %p573_p11, %p570_p10 }
  0x3c   :  { %578 = shalt.err (!%p575_p12)
}
  0x3d   :  { %s579_s0 = scalar_lea.vmem %s45_s9, 32  ;;  %p584_p0 = scmp.lt.s32.totalorder %s45_s9, %s45_s9 }
  0x3e   :  { %p580_p13 = scmp.ne.s32.totalorder %s45_s9, %s579_s0  ;;  %p585_p1 = scmp.lt.s32.totalorder %s579_s0, %s579_s0 }
  0x40   :  { %p586_p2 = por %p585_p1, %p584_p0 }
  0x42   :  { %p587_p3 = pnand %p586_p2, %p580_p13 }
  0x44   :  { %590 = shalt.err (!%p587_p3)
}
  0x45   :  { %47 = dma.hbm_to_vmem [thread:$0]  %s766_s2, 32, %s45_s9, [#allocation7]  }
  0x46   :  { %s591_s22 = scalar_lea.hbm %s768_s4, 16 }
  0x47   :  { %p592_p4 = scmp.ne.s32.totalorder %s768_s4, %s591_s22  ;;  %p595_p5 = scmp.lt.u32.totalorder %s591_s22, %s768_s4 }
  0x49   :  { %p597_p6 = pnand %p595_p5, %p592_p4 }
  0x4b   :  { %600 = shalt.err (!%p597_p6)
}
  0x4c   :  { %s601_s27 = scalar_lea.vmem %s67_s12, 16  ;;  %s605_s30 = scalar_lea.vmem %s67_s12, 32 }
  0x4d   :  { %p602_p7 = scmp.ne.s32.totalorder %s67_s12, %s601_s27  ;;  %p606_p8 = scmp.lt.s32.totalorder %s67_s12, %s67_s12 }
  0x4e   :  { %p607_p9 = scmp.lt.s32.totalorder %s605_s30, %s601_s27 }
  0x50   :  { %p608_p10 = por %p607_p9, %p606_p8 }
  0x52   :  { %p609_p11 = pnand %p608_p10, %p602_p7 }
  0x54   :  { %612 = shalt.err (!%p609_p11)
}
  0x55   :  { %69 = dma.hbm_to_vmem [thread:$0]  %s768_s4, 16, %s67_s12, [#allocation10]  }
  0x56   :  { %635 = dma.done.wait [#allocation4], 128  }
  0x57   :  { %636 = vsyncadd [#allocation4], 4294967168 }
  0x58   :  { %637 = dma.done.wait [#allocation7], 2080  }
  0x59   :  { %638 = vsyncadd [#allocation7], 4294965216 }
  0x5a   :  { %639 = dma.done.wait [#allocation10], 1040  }
  0x5b   :  { %640 = vsyncadd [#allocation10], 4294966256  ;;  %v652_v0 = vmov 0   ;;  %v653_v1 = vmov 0.0   ;;  %v470_v2 = vld [vmem:[#allocation6 + $0x4] ss:$8 sps:$4 sm:$0xff]   ;;  %v112_v27 = vlaneseq }
  0x5c   :  { %240 = vmatprep.mubr.bf16.mxu0 %v652_v0  ;;  %437 = vmatprep.subr.bf16.mxu1 %v653_v1  ;;  %v472_v3 = vld [vmem:[#allocation6] ss:$8 sps:$4 sm:$0xff]   ;;  %v473_v4 = vld [vmem:[#allocation6 + $0x14] ss:$8 sps:$4 sm:$0xff]   ;;  %v475_v5 = vld [vmem:[#allocation6 + $0x10] ss:$8 sps:$4 sm:$0xff]  }
  0x5d   :  { %208 = vmatprep.subr.bf16.mxu0 %v470_v2  ;;  %v476_v6 = vld [vmem:[#allocation6 + $0x24] ss:$8 sps:$4 sm:$0xff]   ;;  %v478_v7 = vld [vmem:[#allocation6 + $0x20] ss:$8 sps:$4 sm:$0xff]   ;;  %v479_v8 = vld [vmem:[#allocation6 + $0x34] ss:$8 sps:$4 sm:$0xff]  }
  0x5e   :  { %209 = vmatpush1.bf16.msra.mxu0 %v472_v3  ;;  %v481_v9 = vld [vmem:[#allocation6 + $0x30] ss:$8 sps:$4 sm:$0xff]   ;;  %v482_v10 = vld [vmem:[#allocation6 + $0x44] ss:$8 sps:$4 sm:$0xff]   ;;  %v484_v13 = vld [vmem:[#allocation6 + $0x40] ss:$8 sps:$4 sm:$0xff]  }
  0x5f   :  { %210 = vmatprep.subr.bf16.mxu0 %v473_v4  ;;  %v495_v11 = vld [vmem:[#allocation9] sm:$0xff]   ;;  %v496_v12 = vld [vmem:[#allocation9 + $0x8] sm:$0xff]   ;;  %v485_v14 = vld [vmem:[#allocation6 + $0x54] ss:$8 sps:$4 sm:$0xff]   ;;  %vm654_vm0 = vmmov 0   ;;  %v113_v28 = vshrl.u32 %v112_v27, 7 }
  0x60   :  { %438 = vmatpush3.bf16.msra.mxu1 %v495_v11  ;;  %v497_v15 = vld [vmem:[#allocation9 + $0x10] sm:$0xff]   ;;  %v488_v17 = vld [vmem:[#allocation6 + $0x64] ss:$8 sps:$4 sm:$0xff]   ;;  %v498_v18 = vld [vmem:[#allocation9 + $0x18] sm:$0xff]   ;;  %453 = vmatprep.mubr.msk.bf16.mxu1 %vm654_vm0, %v653_v1  ;;  %s655_s4 = smov [#allocation12]  }
  0x61   :  { %439 = vmatprep.subr.bf16.mxu1 %v653_v1  ;;  %v487_v16 = vld [vmem:[#allocation6 + $0x50] ss:$8 sps:$4 sm:$0xff]   ;;  %v490_v19 = vld [vmem:[#allocation6 + $0x60] ss:$8 sps:$4 sm:$0xff]   ;;  %v491_v20 = vld [vmem:[#allocation6 + $0x74] ss:$8 sps:$4 sm:$0xff]  }
  0x62   :  { %211 = vmatpush1.bf16.msra.mxu0 %v475_v5  ;;  %v499_v21 = vld [vmem:[#allocation9 + $0x20] sm:$0xff]   ;;  %v493_v22 = vld [vmem:[#allocation6 + $0x70] ss:$8 sps:$4 sm:$0xff]   ;;  %v118_v29 = vsub.s32 1, %v113_v28  ;;  %v110_v30 = vld [vmem:[#allocation8] sm:$0x3] }
  0x63   :  { %212 = vmatprep.subr.bf16.mxu0 %v476_v6  ;;  %v494_v23 = vld [vmem:[#allocation3] sm:$0xff]   ;;  %v500_v24 = vld [vmem:[#allocation9 + $0x28] sm:$0xff]   ;;  %v114_v31 = vsub.s32 0, %v113_v28  ;;  %v427_v47 = vld [vmem:[#allocation11] ss:$0 sm:$0xff]  ;;  %s388_s3 = sshll.u32 %s655_s4, 4  ;;  %s389_s3 = int_to_ptr.vmem [resolvable:$true] %s388_s3 }
  0x64   :  { %440 = vmatpush3.bf16.msra.mxu1 %v496_v12  ;;  %v501_v25 = vld [vmem:[#allocation9 + $0x30] sm:$0xff]   ;;  %v502_v26 = vld [vmem:[#allocation9 + $0x38] sm:$0xff]   ;;  %v119_v32 = vrot.slane %v110_v30, %v118_v29  ;;  %s613_s7 = scalar_lea.vmem %s389_s3, 256  ;;  %p618_p13 = scmp.lt.s32.totalorder %s389_s3, %s389_s3 }
  0x65   :  { %441 = vmatprep.subr.bf16.mxu1 %v653_v1  ;;  %v115_v33 = vrot.slane %v110_v30, %v114_v31  ;;  %p614_p12 = scmp.ne.s32.totalorder %s389_s3, %s613_s7  ;;  %p619_p0 = scmp.lt.s32.totalorder %s613_s7, %s613_s7 }
  0x66   :  { %213 = vmatpush1.bf16.msra.mxu0 %v478_v7 }
  0x67   :  { %214 = vmatprep.subr.bf16.mxu0 %v479_v8  ;;  %p620_p1 = por %p619_p0, %p618_p13 }
  0x68   :  { %442 = vmatpush3.bf16.msra.mxu1 %v497_v15 }
  0x69   :  { %443 = vmatprep.subr.bf16.mxu1 %v653_v1  ;;  %p621_p2 = pnand %p620_p1, %p614_p12 }
  0x6a   :  { %215 = vmatpush1.bf16.msra.mxu0 %v481_v9 }
  0x6b   :  { %216 = vmatprep.subr.bf16.mxu0 %v482_v10 }
  0x6c   :  { %444 = vmatpush3.bf16.msra.mxu1 %v498_v18 }
  0x6d   :  { %445 = vmatprep.subr.bf16.mxu1 %v653_v1 }
  0x6e   :  { %217 = vmatpush1.bf16.msra.mxu0 %v484_v13 }
  0x6f   :  { %218 = vmatprep.subr.bf16.mxu0 %v485_v14 }
  0x70   :  { %446 = vmatpush3.bf16.msra.mxu1 %v499_v21 }
  0x71   :  { %447 = vmatprep.subr.bf16.mxu1 %v653_v1 }
  0x72   :  { %219 = vmatpush1.bf16.msra.mxu0 %v487_v16 }
  0x73   :  { %220 = vmatprep.subr.bf16.mxu0 %v488_v17 }
  0x74   :  { %448 = vmatpush3.bf16.msra.mxu1 %v500_v24 }
  0x75   :  { %449 = vmatprep.subr.bf16.mxu1 %v653_v1 }
  0x76   :  { %221 = vmatpush1.bf16.msra.mxu0 %v490_v19 }
  0x77   :  { %222 = vmatprep.subr.bf16.mxu0 %v491_v20 }
  0x78   :  { %450 = vmatpush3.bf16.msra.mxu1 %v501_v25 }
  0x79   :  { %451 = vmatprep.subr.bf16.mxu1 %v653_v1 }
  0x7a   :  { %223 = vmatpush1.bf16.msra.mxu0 %v493_v22 }
  0x7c   :  { %452 = vmatpush3.bf16.msra.mxu1 %v502_v26 }
  0x7d   :  { %241 = vmatmul.mubr.bf16.vlgmr.msra.gmra.mrb[0].mxu0 %v494_v23 }
 0x150   :  { %v242_v34 = vpop.f32.mrb[0].mxu0 }
 0x151   :  { %v244_v35 = vpop.f32.mrb[1].mxu0  ;;  %v243_v39 = vadd.f32 %v242_v34, %v115_v33 }
 0x152   :  { %v245_v36 = vadd.f32 %v244_v35, %v119_v32  ;;  %v246_v37 = vpop.f32.mrb[2].mxu0 }
 0x153   :  { %v248_v38 = vpop.f32.mrb[3].mxu0  ;;  %v247_v43 = vadd.f32 %v246_v37, %v115_v33 }
 0x154   :  { %v251_v40 = vmax.f32 %v245_v36, 0.0  ;;  %v249_v41 = vadd.f32 %v248_v38, %v119_v32 }
 0x156   :  { %v253_v42 = vmul.f32 %v251_v40, %v243_v39  ;;  %v252_v44 = vmax.f32 %v249_v41, 0.0 }
 0x158   :  { %v254_v45 = vmul.f32 %v252_v44, %v247_v43 }
 0x15a   :  { %v257_v46 = vpack.c.bf16 %v254_v45, %v253_v42 }
 0x15c   :  { %454 = vmatmul.mubr.bf16.vlgmr.msra.gmra.mrb[0].mxu1 %v257_v46 }
 0x22f   :  { %v356_v48 = vpop.f32.mrb[0].mxu1 }
 0x230   :  { %v379_v49 = vadd.f32 %v427_v47, %v356_v48  ;;  %v455_v50 = vpop.f32.mrb[1].mxu1 }
 0x231   :  { %v359_v51 = vpop.f32.mrb[2].mxu1 }
 0x232   :  { %381 = vst [vmem:[#allocation12] sm:$0xff] %v379_v49  ;;  %v380_v52 = vadd.f32 %v427_v47, %v359_v51  ;;  %v456_v53 = vpop.f32.mrb[3].mxu1 }
 0x234   :  { %382 = vst [vmem:[#allocation12 + $0x8] sm:$0xff] %v380_v52 }
 0x235   :  { %624 = shalt.err (!%p621_p2)
}
 0x236   :  { %s625_s11 = scalar_lea.hbm %s769_s5, 256 }
 0x237   :  { %p626_p3 = scmp.ne.s32.totalorder %s769_s5, %s625_s11  ;;  %p629_p4 = scmp.lt.u32.totalorder %s625_s11, %s769_s5 }
 0x239   :  { %p631_p5 = pnand %p629_p4, %p626_p3 }
 0x23b   :  { %634 = shalt.err (!%p631_p5)
}
 0x23c   :  { %394 = dma.vmem_to_hbm [thread:$0]  %s389_s3, 256, %s769_s5, [#allocation5], %s644_s28, %s644_s28, %s645_s29  }
 0x23d   :  { %641 = dma.done.wait [#allocation5], 256  }
 0x23e   :  { %642 = vsyncadd [#allocation5], 4294967040 }
 0x23f   :  { %398 = vsyncpa [#allocation4], 1 }
 0x240   :  { %399 = vsyncpa [#allocation7], 1 }
 0x241   :  { %400 = vsyncpa [#allocation10], 1 }
 0x242   :  { %401 = vsyncpa [#allocation5], 1 }

</bundles_post_ra>
